<compile_context>
chip_gen: v7x
topology: tpu7x:2x2x1
jax: 0.10.0
libtpu: 0.0.40
codegen_flags: <defaults>
</compile_context>

<pallas_src>
import jax
import jax.numpy as jnp
import numpy as np
from jax.experimental import pallas as pl
from jax.experimental.pallas import tpu as pltpu

# -------------------- model dims (synthetic, small) --------------------
BATCH = 8          # batch
N_OBS = 8          # env.n_observation (LSTM input_size)
HIDDEN = 32        # lstm_hidden_size (must be 32 to match fc_1 = Linear(32,16))
FC1 = 16
N_ACT = 4          # env.n_action
LANES = 128        # one f32 vreg row; == 4*HIDDEN by construction

assert 4 * HIDDEN == LANES, "fused i|f|g|o gate tile is exactly one 128-lane vreg"


# -------------------- Pallas kernel: T LSTM steps + MLP head, no grid --------------------
def qnet_kernel(x_ref, h0_ref, c0_ref,
                w_ih_ref, w_hh_ref, b_ref, w1_ref, b1_ref, w2_ref, b2_ref,
                q_ref, hout_ref, cout_ref):
    T = x_ref.shape[0]
    H = HIDDEN

    # Loop-invariant weight loads, hoisted once per call (weights DMA'd once into VMEM).
    w_ih = w_ih_ref[...]   # (N_OBS, 128)  gate cols [i|f|g|o], 0.5 folded into i/f/o cols
    w_hh = w_hh_ref[...]   # (H, 128)
    b = b_ref[...]         # (1, 128)      b_ih + b_hh, 0.5 folded into i/f/o cols
    w1 = w1_ref[...]       # (H, 16)
    b1 = b1_ref[...]       # (1, 16)
    w2 = w2_ref[...]       # (16, 128)     only cols [0, N_ACT) nonzero
    b2 = b2_ref[...]       # (1, 128)

    h = h0_ref[...]        # (B, H)
    c = c0_ref[...]        # (B, H)

    # T is static at trace time -> this Python loop is the fully-unrolled in-kernel time
    # loop (== lax.fori_loop(..., unroll=True)).  No per-step grid/launch overhead, and the
    # LLO scheduler can overlap step t's head/store with step t+1's recurrence.
    for t in range(T):
        # Input projection is independent of h -> off the serial h->h critical path.
        xw_t = jnp.dot(x_ref[t], w_ih, preferred_element_type=jnp.float32) + b   # (B, 128)
        # Fused i|f|g|o gate matmul on the recurrent path (K = 32 only).
        gates = jnp.dot(h, w_hh, preferred_element_type=jnp.float32) + xw_t      # (B, 128)
        # One whole-vreg tanh: tanh for g lanes, sigmoid = 0.5*tanh(x/2)+0.5 for i/f/o
        # (the 0.5 pre-scale was folded into the packed weights/bias).
        th = jnp.tanh(gates)
        i_g = th[:, 0 * H:1 * H] * 0.5 + 0.5
        f_g = th[:, 1 * H:2 * H] * 0.5 + 0.5
        g_g = th[:, 2 * H:3 * H]
        o_g = th[:, 3 * H:4 * H] * 0.5 + 0.5
        c = f_g * c + i_g * g_g
        h = o_g * jnp.tanh(c)
        # MLP head (off the recurrent chain): Linear(32,16)+ReLU, Linear(16,n_act padded).
        z1 = jnp.maximum(jnp.dot(h, w1, preferred_element_type=jnp.float32) + b1, 0.0)
        q = jnp.dot(z1, w2, preferred_element_type=jnp.float32) + b2
        q_ref[t] = q   # full 128-lane, unmasked store; wrapper slices to n_action

    hout_ref[...] = h
    cout_ref[...] = c


# -------------------- wrappers --------------------
@jax.jit
def qnetwork_rollout(states, hidden0, hidden1, params):
    """states: (T, B, N_OBS); hidden0/hidden1: (B, HIDDEN).
    Returns (q_all (T,B,N_ACT), (h_T (B,HIDDEN), c_T (B,HIDDEN)))."""
    T = states.shape[0]
    vmem = pl.BlockSpec(memory_space=pltpu.MemorySpace.VMEM)   # whole array resident in VMEM
    out_shapes = (
        jax.ShapeDtypeStruct((T, BATCH, LANES), jnp.float32),  # q per step (padded lanes)
        jax.ShapeDtypeStruct((BATCH, HIDDEN), jnp.float32),    # final h
        jax.ShapeDtypeStruct((BATCH, HIDDEN), jnp.float32),    # final c
    )
    q_pad, h_T, c_T = pl.pallas_call(
        qnet_kernel,
        out_shape=out_shapes,
        in_specs=[vmem] * 10,
        out_specs=(vmem, vmem, vmem),
    )(states.astype(jnp.float32),
      hidden0.astype(jnp.float32),
      hidden1.astype(jnp.float32),
      params["w_ih"], params["w_hh"], params["b"],
      params["w1"], params["b1"], params["w2"], params["b2"])
    return q_pad[:, :, :N_ACT], (h_T, c_T)


def qnetwork_forward(state_in, hidden0, hidden1, params):
    """Single step — matches the PyTorch module's forward (seq_len == 1)."""
    q_all, (h_new, c_new) = qnetwork_rollout(state_in[None], hidden0, hidden1, params)
    return q_all[0], (h_new, c_new)


# -------------------- pure-JAX reference (for verification) --------------------
def qnetwork_ref(state_in, h0, c0, p):
    H = HIDDEN
    gates = state_in @ p["w_ih"] + p["b_ih"] + h0 @ p["w_hh"] + p["b_hh"]
    i_g = jax.nn.sigmoid(gates[:, 0 * H:1 * H])
    f_g = jax.nn.sigmoid(gates[:, 1 * H:2 * H])
    g_g = jnp.tanh(gates[:, 2 * H:3 * H])
    o_g = jax.nn.sigmoid(gates[:, 3 * H:4 * H])
    c_new = f_g * c0 + i_g * g_g
    h_new = o_g * jnp.tanh(c_new)
    z1 = jnp.maximum(h_new @ p["w1"] + p["b1"], 0.0)
    q = z1 @ p["w2"] + p["b2"]
    return q, (h_new, c_new)


def rollout_ref(states, h0, c0, p):
    h, c = h0, c0
    qs = []
    for t in range(states.shape[0]):
        q, (h, c) = qnetwork_ref(states[t], h, c, p)
        qs.append(q)
    return jnp.stack(qs), (h, c)


# -------------------- deterministic parameter init & packing --------------------
def init_params(key):
    ks = jax.random.split(key, 8)
    s_lstm = 1.0 / np.sqrt(HIDDEN)
    s_fc1 = 1.0 / np.sqrt(HIDDEN)   # fc_1 fan_in = 32
    s_fc2 = 1.0 / np.sqrt(FC1)      # fc_2 fan_in = 16
    u = lambda k, shape, s: jax.random.uniform(k, shape, jnp.float32, -s, s)
    return {
        # pre-transposed: (in_features, out_features); gate order i,f,g,o along out axis
        "w_ih": u(ks[0], (N_OBS, 4 * HIDDEN), s_lstm),
        "w_hh": u(ks[1], (HIDDEN, 4 * HIDDEN), s_lstm),
        "b_ih": u(ks[2], (1, 4 * HIDDEN), s_lstm),
        "b_hh": u(ks[3], (1, 4 * HIDDEN), s_lstm),
        "w1":   u(ks[4], (HIDDEN, FC1), s_fc1),
        "b1":   u(ks[5], (1, FC1), s_fc1),
        "w2":   u(ks[6], (FC1, N_ACT), s_fc2),
        "b2":   u(ks[7], (1, N_ACT), s_fc2),
    }


def pack_params(p):
    """Fold b_ih+b_hh, fold the 0.5 sigmoid pre-scale into i/f/o gate columns, and
    zero-pad fc2 to a lane-dense 128-wide output."""
    H = HIDDEN
    col_scale = np.ones((1, 4 * H), np.float32)
    col_scale[:, :2 * H] = 0.5      # i, f gates
    col_scale[:, 3 * H:] = 0.5      # o gate   (g columns stay 1.0)
    col_scale = jnp.asarray(col_scale)
    w2 = jnp.zeros((FC1, LANES), jnp.float32).at[:, :N_ACT].set(p["w2"])
    b2 = jnp.zeros((1, LANES), jnp.float32).at[:, :N_ACT].set(p["b2"])
    return {
        "w_ih": p["w_ih"] * col_scale,
        "w_hh": p["w_hh"] * col_scale,
        "b": (p["b_ih"] + p["b_hh"]) * col_scale,
        "w1": p["w1"], "b1": p["b1"],
        "w2": w2, "b2": b2,
    }


if __name__ == "__main__":
    key = jax.random.PRNGKey(0)
    k_par, k_x, k_h, k_c, k_s = jax.random.split(key, 5)
    raw = init_params(k_par)
    packed = pack_params(raw)

    # --- single step: exact semantics of the PyTorch module's forward ---
    state_in = jax.random.normal(k_x, (BATCH, N_OBS), jnp.float32)
    hidden0 = jax.random.normal(k_h, (BATCH, HIDDEN), jnp.float32)
    hidden1 = jax.random.normal(k_c, (BATCH, HIDDEN), jnp.float32)

    q, (h_new, c_new) = qnetwork_forward(state_in, hidden0, hidden1, packed)
    jax.block_until_ready((q, h_new, c_new))

    q_r, (h_r, c_r) = qnetwork_ref(state_in, hidden0, hidden1, raw)
    np.testing.assert_allclose(np.asarray(q), np.asarray(q_r), rtol=1e-4, atol=5e-5)
    np.testing.assert_allclose(np.asarray(h_new), np.asarray(h_r), rtol=1e-4, atol=5e-5)
    np.testing.assert_allclose(np.asarray(c_new), np.asarray(c_r), rtol=1e-4, atol=5e-5)

    # --- multi-step rollout: one pallas_call, weights DMA'd once, time loop in-kernel ---
    T = 8
    states = jax.random.normal(k_s, (T, BATCH, N_OBS), jnp.float32)
    q_all, (h_T, c_T) = qnetwork_rollout(states, hidden0, hidden1, packed)
    jax.block_until_ready((q_all, h_T, c_T))

    q_all_r, (h_T_r, c_T_r) = rollout_ref(states, hidden0, hidden1, raw)
    np.testing.assert_allclose(np.asarray(q_all), np.asarray(q_all_r), rtol=1e-4, atol=5e-5)
    np.testing.assert_allclose(np.asarray(h_T), np.asarray(h_T_r), rtol=1e-4, atol=5e-5)
    np.testing.assert_allclose(np.asarray(c_T), np.asarray(c_T_r), rtol=1e-4, atol=5e-5)

    print("KERNEL_OK")
</pallas_src>

<mosaic_0001>
module attributes {stable_mosaic.version = 11 : i64} {
  func.func @qnet_kernel(%arg0: memref<1x8x8xf32, #tpu.memory_space<vmem>>, %arg1: memref<8x32xf32, #tpu.memory_space<vmem>>, %arg2: memref<8x32xf32, #tpu.memory_space<vmem>>, %arg3: memref<8x128xf32, #tpu.memory_space<vmem>>, %arg4: memref<32x128xf32, #tpu.memory_space<vmem>>, %arg5: memref<1x128xf32, #tpu.memory_space<vmem>>, %arg6: memref<32x16xf32, #tpu.memory_space<vmem>>, %arg7: memref<1x16xf32, #tpu.memory_space<vmem>>, %arg8: memref<16x128xf32, #tpu.memory_space<vmem>>, %arg9: memref<1x128xf32, #tpu.memory_space<vmem>>, %arg10: memref<1x8x128xf32, #tpu.memory_space<vmem>>, %arg11: memref<8x32xf32, #tpu.memory_space<vmem>>, %arg12: memref<8x32xf32, #tpu.memory_space<vmem>>) attributes {dimension_semantics = [], scalar_prefetch = 0 : i64, scratch_operands = 0 : i64, tpu.core_type = #tpu.core_type<tc>} {
    %c0 = arith.constant 0 : index
    %c0_0 = arith.constant 0 : index
    %0 = vector.load %arg3[%c0, %c0_0] : memref<8x128xf32, #tpu.memory_space<vmem>>, vector<8x128xf32>
    %c0_1 = arith.constant 0 : index
    %c0_2 = arith.constant 0 : index
    %1 = vector.load %arg4[%c0_1, %c0_2] : memref<32x128xf32, #tpu.memory_space<vmem>>, vector<32x128xf32>
    %c0_3 = arith.constant 0 : index
    %c0_4 = arith.constant 0 : index
    %2 = vector.load %arg5[%c0_3, %c0_4] : memref<1x128xf32, #tpu.memory_space<vmem>>, vector<1x128xf32>
    %c0_5 = arith.constant 0 : index
    %c0_6 = arith.constant 0 : index
    %3 = vector.load %arg6[%c0_5, %c0_6] : memref<32x16xf32, #tpu.memory_space<vmem>>, vector<32x16xf32>
    %c0_7 = arith.constant 0 : index
    %c0_8 = arith.constant 0 : index
    %4 = vector.load %arg7[%c0_7, %c0_8] : memref<1x16xf32, #tpu.memory_space<vmem>>, vector<1x16xf32>
    %c0_9 = arith.constant 0 : index
    %c0_10 = arith.constant 0 : index
    %5 = vector.load %arg8[%c0_9, %c0_10] : memref<16x128xf32, #tpu.memory_space<vmem>>, vector<16x128xf32>
    %c0_11 = arith.constant 0 : index
    %c0_12 = arith.constant 0 : index
    %6 = vector.load %arg9[%c0_11, %c0_12] : memref<1x128xf32, #tpu.memory_space<vmem>>, vector<1x128xf32>
    %c0_13 = arith.constant 0 : index
    %c0_14 = arith.constant 0 : index
    %7 = vector.load %arg1[%c0_13, %c0_14] : memref<8x32xf32, #tpu.memory_space<vmem>>, vector<8x32xf32>
    %c0_15 = arith.constant 0 : index
    %c0_16 = arith.constant 0 : index
    %8 = vector.load %arg2[%c0_15, %c0_16] : memref<8x32xf32, #tpu.memory_space<vmem>>, vector<8x32xf32>
    %c0_17 = arith.constant 0 : index
    %c0_18 = arith.constant 0 : index
    %c0_19 = arith.constant 0 : index
    %9 = vector.load %arg0[%c0_17, %c0_18, %c0_19] : memref<1x8x8xf32, #tpu.memory_space<vmem>>, vector<1x8x8xf32>
    %10 = vector.shape_cast %9 : vector<1x8x8xf32> to vector<8x8xf32>
    %cst = arith.constant dense<0.000000e+00> : vector<8x128xf32>
    %11 = tpu.matmul %10, %0, %cst {dimension_numbers = #tpu.dot_dimension_numbers<[1], [0], [0], [1], [0, 0, 1, 1], [], []>} : vector<8x8xf32>, vector<8x128xf32>, vector<8x128xf32> -> vector<8x128xf32>
    %12 = vector.broadcast %2 : vector<1x128xf32> to vector<8x128xf32>
    %13 = arith.addf %11, %12 : vector<8x128xf32>
    %cst_20 = arith.constant dense<0.000000e+00> : vector<8x128xf32>
    %14 = tpu.matmul %7, %1, %cst_20 {dimension_numbers = #tpu.dot_dimension_numbers<[1], [0], [0], [1], [0, 0, 1, 1], [], []>} : vector<8x32xf32>, vector<32x128xf32>, vector<8x128xf32> -> vector<8x128xf32>
    %15 = arith.addf %14, %13 : vector<8x128xf32>
    %16 = math.tanh %15 : vector<8x128xf32>
    %17 = vector.extract_strided_slice %16 {offsets = [0, 0], sizes = [8, 32], strides = [1, 1]} : vector<8x128xf32> to vector<8x32xf32>
    %cst_21 = arith.constant 5.000000e-01 : f32
    %18 = vector.broadcast %cst_21 : f32 to vector<8x32xf32>
    %19 = arith.mulf %17, %18 : vector<8x32xf32>
    %cst_22 = arith.constant 5.000000e-01 : f32
    %20 = vector.broadcast %cst_22 : f32 to vector<8x32xf32>
    %21 = arith.addf %19, %20 : vector<8x32xf32>
    %22 = vector.extract_strided_slice %16 {offsets = [0, 32], sizes = [8, 32], strides = [1, 1]} : vector<8x128xf32> to vector<8x32xf32>
    %cst_23 = arith.constant 5.000000e-01 : f32
    %23 = vector.broadcast %cst_23 : f32 to vector<8x32xf32>
    %24 = arith.mulf %22, %23 : vector<8x32xf32>
    %cst_24 = arith.constant 5.000000e-01 : f32
    %25 = vector.broadcast %cst_24 : f32 to vector<8x32xf32>
    %26 = arith.addf %24, %25 : vector<8x32xf32>
    %27 = vector.extract_strided_slice %16 {offsets = [0, 64], sizes = [8, 32], strides = [1, 1]} : vector<8x128xf32> to vector<8x32xf32>
    %28 = vector.extract_strided_slice %16 {offsets = [0, 96], sizes = [8, 32], strides = [1, 1]} : vector<8x128xf32> to vector<8x32xf32>
    %cst_25 = arith.constant 5.000000e-01 : f32
    %29 = vector.broadcast %cst_25 : f32 to vector<8x32xf32>
    %30 = arith.mulf %28, %29 : vector<8x32xf32>
    %cst_26 = arith.constant 5.000000e-01 : f32
    %31 = vector.broadcast %cst_26 : f32 to vector<8x32xf32>
    %32 = arith.addf %30, %31 : vector<8x32xf32>
    %33 = arith.mulf %26, %8 : vector<8x32xf32>
    %34 = arith.mulf %21, %27 : vector<8x32xf32>
    %35 = arith.addf %33, %34 : vector<8x32xf32>
    %36 = math.tanh %35 : vector<8x32xf32>
    %37 = arith.mulf %32, %36 : vector<8x32xf32>
    %cst_27 = arith.constant dense<0.000000e+00> : vector<8x16xf32>
    %38 = tpu.matmul %37, %3, %cst_27 {dimension_numbers = #tpu.dot_dimension_numbers<[1], [0], [0], [1], [0, 0, 1, 1], [], []>} : vector<8x32xf32>, vector<32x16xf32>, vector<8x16xf32> -> vector<8x16xf32>
    %39 = vector.broadcast %4 : vector<1x16xf32> to vector<8x16xf32>
    %40 = arith.addf %38, %39 : vector<8x16xf32>
    %cst_28 = arith.constant 0.000000e+00 : f32
    %41 = vector.broadcast %cst_28 : f32 to vector<8x16xf32>
    %42 = arith.maximumf %40, %41 : vector<8x16xf32>
    %cst_29 = arith.constant dense<0.000000e+00> : vector<8x128xf32>
    %43 = tpu.matmul %42, %5, %cst_29 {dimension_numbers = #tpu.dot_dimension_numbers<[1], [0], [0], [1], [0, 0, 1, 1], [], []>} : vector<8x16xf32>, vector<16x128xf32>, vector<8x128xf32> -> vector<8x128xf32>
    %44 = vector.broadcast %6 : vector<1x128xf32> to vector<8x128xf32>
    %45 = arith.addf %43, %44 : vector<8x128xf32>
    %c0_30 = arith.constant 0 : index
    %c0_31 = arith.constant 0 : index
    %c0_32 = arith.constant 0 : index
    %46 = vector.load %arg10[%c0_30, %c0_31, %c0_32] : memref<1x8x128xf32, #tpu.memory_space<vmem>>, vector<1x8x128xf32>
    %47 = vector.shape_cast %46 : vector<1x8x128xf32> to vector<8x128xf32>
    %48 = vector.shape_cast %45 : vector<8x128xf32> to vector<1x8x128xf32>
    tpu.vector_store %arg10[%c0_30, %c0_31, %c0_32], %48 {strides = array<i32>} : memref<1x8x128xf32, #tpu.memory_space<vmem>>, vector<1x8x128xf32>,
    %c0_33 = arith.constant 0 : index
    %c0_34 = arith.constant 0 : index
    %49 = vector.load %arg11[%c0_33, %c0_34] : memref<8x32xf32, #tpu.memory_space<vmem>>, vector<8x32xf32>
    tpu.vector_store %arg11[%c0_33, %c0_34], %37 {strides = array<i32>} : memref<8x32xf32, #tpu.memory_space<vmem>>, vector<8x32xf32>,
    %c0_35 = arith.constant 0 : index
    %c0_36 = arith.constant 0 : index
    %50 = vector.load %arg12[%c0_35, %c0_36] : memref<8x32xf32, #tpu.memory_space<vmem>>, vector<8x32xf32>
    tpu.vector_store %arg12[%c0_35, %c0_36], %35 {strides = array<i32>} : memref<8x32xf32, #tpu.memory_space<vmem>>, vector<8x32xf32>,
    return
  }
}

</mosaic_0001>

<bundles_post_ra>
// kernel: qnetwork_rollout.1
= control target key start
LH: loop header
LB: loop body
LE: loop exit
PB: predicated region body
PF: predicated region fallthrough
CT: control target
= control target key end

     0   :  { %18 = vsyncpa [#allocation3], 0  ;;  %s923_s0 = inlined_call_operand.hbm [shape: f32[1,8,8], index: 0, kind: input, shape index: {}]   ;;  %s924_s1 = inlined_call_operand.hbm [shape: f32[8,32], index: 1, kind: input, shape index: {}]   ;;  %s925_s2 = inlined_call_operand.hbm [shape: f32[8,32], index: 2, kind: input, shape index: {}]   ;;  %s926_s3 = inlined_call_operand.vmem [shape: f32[8,128], index: 3, kind: input, shape index: {}]   ;;  %s927_s4 = inlined_call_operand.vmem [shape: f32[32,128], index: 4, kind: input, shape index: {}]   ;;  %s928_s5 = inlined_call_operand.vmem [shape: f32[1,128], index: 5, kind: input, shape index: {}]   ;;  %s929_s6 = inlined_call_operand.vmem [shape: f32[32,16], index: 6, kind: input, shape index: {}]   ;;  %s930_s7 = inlined_call_operand.vmem [shape: f32[1,16], index: 7, kind: input, shape index: {}]   ;;  %s931_s8 = inlined_call_operand.vmem [shape: f32[16,128], index: 8, kind: input, shape index: {}]   ;;  %s932_s9 = inlined_call_operand.hbm [shape: f32[1,128], index: 9, kind: input, shape index: {}]   ;;  %s933_s10 = inlined_call_operand.vmem [shape: f32[1,8,128], index: 10, kind: output, shape index: {0}]   ;;  %s934_s11 = inlined_call_operand.hbm [shape: f32[8,32], index: 11, kind: output, shape index: {1}]   ;;  %s935_s12 = inlined_call_operand.hbm [shape: f32[8,32], index: 12, kind: output, shape index: {2}]  }
   0x1   :  { %19 = vsyncpa [#allocation6], 0 }
   0x2   :  { %20 = vsyncpa [#allocation9], 0 }
   0x3   :  { %21 = vsyncpa [#allocation4], 0 }
   0x4   :  { %22 = vsyncpa [#allocation12], 0  ;;  %s719_s21 = smov [#allocation5]   ;;  %s720_s23 = smov [#allocation2]  }
   0x5   :  { %s39_s22 = sshll.u32 %s719_s21, 4  ;;  %s29_s24 = sshll.u32 %s720_s23, 4  ;;  %s40_s22 = int_to_ptr.vmem [resolvable:$true] %s39_s22  ;;  %s30_s24 = int_to_ptr.vmem [resolvable:$true] %s29_s24 }
   0x6   :  { %s577_s27 = scalar_lea.hbm %s924_s1, 128 }
   0x7   :  { %p578_p0 = scmp.ne.s32.totalorder %s924_s1, %s577_s27  ;;  %p581_p1 = scmp.lt.u32.totalorder %s577_s27, %s924_s1 }
   0x9   :  { %p583_p2 = pnand %p581_p1, %p578_p0 }
   0xb   :  { %586 = shalt.err (!%p583_p2)
}
   0xc   :  { %s587_s14 = scalar_lea.vmem %s40_s22, 128  ;;  %p592_p4 = scmp.lt.s32.totalorder %s40_s22, %s40_s22 }
   0xd   :  { %p588_p3 = scmp.ne.s32.totalorder %s40_s22, %s587_s14  ;;  %p593_p5 = scmp.lt.s32.totalorder %s587_s14, %s587_s14 }
   0xf   :  { %p594_p6 = por %p593_p5, %p592_p4 }
  0x11   :  { %p595_p7 = pnand %p594_p6, %p588_p3 }
  0x13   :  { %598 = shalt.err (!%p595_p7)
}
  0x14   :  { %42 = dma.hbm_to_vmem [thread:$0]  %s924_s1, 128, %s40_s22, [#allocation6]  }
  0x15   :  { %s599_s19 = scalar_lea.hbm %s923_s0, 128 }
  0x16   :  { %p600_p8 = scmp.ne.s32.totalorder %s923_s0, %s599_s19  ;;  %p603_p9 = scmp.lt.u32.totalorder %s599_s19, %s923_s0 }
  0x18   :  { %p605_p10 = pnand %p603_p9, %p600_p8 }
  0x1a   :  { %608 = shalt.err (!%p605_p10)
}
  0x1b   :  { %s609_s26 = scalar_lea.vmem %s30_s24, 128  ;;  %p614_p12 = scmp.lt.s32.totalorder %s30_s24, %s30_s24 }
  0x1c   :  { %p610_p11 = scmp.ne.s32.totalorder %s30_s24, %s609_s26  ;;  %p615_p13 = scmp.lt.s32.totalorder %s609_s26, %s609_s26 }
  0x1e   :  { %p616_p0 = por %p615_p13, %p614_p12 }
  0x20   :  { %p617_p1 = pnand %p616_p0, %p610_p11 }
  0x22   :  { %620 = shalt.err (!%p617_p1)
}
  0x23   :  { %32 = dma.hbm_to_vmem [thread:$0]  %s923_s0, 128, %s30_s24, [#allocation3]  }
  0x24   :  { %s721_s27 = smov [#allocation7]   ;;  %s722_s29 = smov [#allocation8]  }
  0x25   :  { %s49_s28 = sshll.u32 %s721_s27, 4  ;;  %s71_s30 = sshll.u32 %s722_s29, 4  ;;  %s50_s28 = int_to_ptr.vmem [resolvable:$true] %s49_s28  ;;  %s72_s30 = int_to_ptr.vmem [resolvable:$true] %s71_s30 }
  0x26   :  { %s621_s15 = scalar_lea.hbm %s925_s2, 128 }
  0x27   :  { %p622_p2 = scmp.ne.s32.totalorder %s925_s2, %s621_s15  ;;  %p625_p3 = scmp.lt.u32.totalorder %s621_s15, %s925_s2 }
  0x29   :  { %p627_p4 = pnand %p625_p3, %p622_p2 }
  0x2b   :  { %630 = shalt.err (!%p627_p4)
}
  0x2c   :  { %s631_s0 = scalar_lea.vmem %s50_s28, 128  ;;  %p636_p6 = scmp.lt.s32.totalorder %s50_s28, %s50_s28 }
  0x2d   :  { %p632_p5 = scmp.ne.s32.totalorder %s50_s28, %s631_s0  ;;  %p637_p7 = scmp.lt.s32.totalorder %s631_s0, %s631_s0 }
  0x2f   :  { %p638_p8 = por %p637_p7, %p636_p6 }
  0x31   :  { %p639_p9 = pnand %p638_p8, %p632_p5 }
  0x33   :  { %642 = shalt.err (!%p639_p9)
}
  0x34   :  { %52 = dma.hbm_to_vmem [thread:$0]  %s925_s2, 128, %s50_s28, [#allocation6]  }
  0x35   :  { %s643_s25 = scalar_lea.hbm %s932_s9, 16 }
  0x36   :  { %p644_p10 = scmp.ne.s32.totalorder %s932_s9, %s643_s25  ;;  %p647_p11 = scmp.lt.u32.totalorder %s643_s25, %s932_s9 }
  0x38   :  { %p649_p12 = pnand %p647_p11, %p644_p10 }
  0x3a   :  { %652 = shalt.err (!%p649_p12)
}
  0x3b   :  { %s653_s29 = scalar_lea.vmem %s72_s30, 16  ;;  %s657_s13 = scalar_lea.vmem %s72_s30, 32 }
  0x3c   :  { %p654_p13 = scmp.ne.s32.totalorder %s72_s30, %s653_s29  ;;  %p658_p0 = scmp.lt.s32.totalorder %s72_s30, %s72_s30 }
  0x3d   :  { %p659_p1 = scmp.lt.s32.totalorder %s657_s13, %s653_s29 }
  0x3f   :  { %p660_p2 = por %p659_p1, %p658_p0 }
  0x41   :  { %p661_p3 = pnand %p660_p2, %p654_p13 }
  0x43   :  { %664 = shalt.err (!%p661_p3)
}
  0x44   :  { %74 = dma.hbm_to_vmem [thread:$0]  %s932_s9, 16, %s72_s30, [#allocation9]  }
  0x45   :  { %709 = dma.done.wait [#allocation3], 128  }
  0x46   :  { %710 = vsyncadd [#allocation3], 4294967168 }
  0x47   :  { %711 = dma.done.wait [#allocation6], 256  }
  0x48   :  { %712 = vsyncadd [#allocation6], 4294967040 }
  0x49   :  { %713 = dma.done.wait [#allocation9], 16  }
  0x4a   :  { %714 = vsyncadd [#allocation9], 4294967280  ;;  %v723_v0 = vmov 0.0   ;;  %vm724_vm0 = vmmov 0   ;;  %v725_v1 = vmov 0.0|0.0   ;;  %vm110_vm1 = vcmask 64512  }
  0x4b   :  { %509 = vmatprep.subr.mxu0 %v723_v0  ;;  %511 = vmatprep.mubr.msk.f32.mxu0 %vm724_vm0, %v723_v0  ;;  %v87_v2 = vld [vmem:[%s926_s3] sm:$0xff]  ;;  %v89_v5 = vld [vmem:[%s927_s4 + $0x8] sm:$0xff]  ;;  %v90_v6 = vld [vmem:[%s927_s4 + $0x10] sm:$0xff]  ;;  %vm184_vm2 = vcmask 261120   ;;  %s727_s21 = smov 32   ;;  %s728_s13 = smov 96  }
  0x4c   :  { %549 = vmatprep.subr.bf16.mxu1 %v725_v1  ;;  %533 = vmatprep.mubr.msk.f32.mxu1 %vm724_vm0, %v723_v0  ;;  %v103_v3 = vld [vmem:[#allocation2] sm:$0xff]  ;;  %v91_v7 = vld [vmem:[%s927_s4 + $0x18] sm:$0xff]  ;;  %v101_v10 = vld [vmem:[#allocation5] sm:$0xff]  ;;  %vm370_vm3 = vcmask 130048   ;;  %s729_s15 = smov [#allocation10]   ;;  %s730_s17 = smov [#allocation11]  }
  0x4d   :  { %v88_v4 = vld [vmem:[%s927_s4] sm:$0xff]  ;;  %510 = vmatpush3.msra.mxu0 %v87_v2  ;;  %v547_v9 = vpack.c.bf16 %v91_v7, %v90_v6  ;;  %s726_s4 = smov 64   ;;  %v102_v16 = vld [vmem:[#allocation7] sm:$0xff]  ;;  %v94_v26 = vld [vmem:[%s929_s6 + $0x8] sm:$0xff]  ;;  %s460_s16 = sshll.u32 %s729_s15, 4  ;;  %s461_s16 = int_to_ptr.vmem [resolvable:$true] %s460_s16 }
  0x4e   :  { %512 = vmatmul.mubr.msk.f32.vlgmr.msra.gmra.mrb[0].mxu0 %vm110_vm1, %v103_v3  ;;  %543 = vmatprep.subr.bf16.mxu0 %v725_v1  ;;  %v544_v8 = vpack.c.bf16 %v89_v5, %v88_v4  ;;  %v487_v11 = vld [vmem:[%s928_s5] ss:$0 sm:$0xff]  ;;  %v95_v27 = vld [vmem:[%s929_s6 + $0x10] sm:$0xff]  ;;  %v96_v29 = vld [vmem:[%s929_s6 + $0x18] sm:$0xff]  ;;  %s470_s18 = sshll.u32 %s730_s17, 4  ;;  %s665_s19 = scalar_lea.vmem %s461_s16, 128  ;;  %s471_s18 = int_to_ptr.vmem [resolvable:$true] %s470_s18 }
  0x4f   :  { %522 = vmatprep.mubr.msk.f32.mxu0 %vm724_vm0, %v723_v0  ;;  %v93_v25 = vld [vmem:[%s929_s6] sm:$0xff]  ;;  %v553_v30 = vpack.c.bf16 %v96_v29, %v95_v27  ;;  %v99_v37 = vld [vmem:[%s931_s8 + $0x8] sm:$0xff]  ;;  %p666_p4 = scmp.ne.s32.totalorder %s461_s16, %s665_s19  ;;  %p670_p5 = scmp.lt.s32.totalorder %s461_s16, %s461_s16 }
  0x50   :  { %545 = vmatpush3.bf16.msra.mxu0 %v544_v8  ;;  %v550_v28 = vpack.c.bf16 %v94_v26, %v93_v25  ;;  %v98_v36 = vld [vmem:[%s931_s8] sm:$0xff]  ;;  %p671_p6 = scmp.lt.s32.totalorder %s665_s19, %s665_s19 }
  0x51   :  { %546 = vmatprep.subr.bf16.mxu0 %v725_v1  ;;  %v556_v38 = vpack.c.bf16 %v99_v37, %v98_v36  ;;  %v490_v39 = vld [vmem:[%s930_s7] ss:$0 sm:$0xff] }
  0x52   :  { %551 = vmatpush3.bf16.msra.mxu1 %v550_v28  ;;  %p672_p7 = por %p671_p6, %p670_p5 }
  0x53   :  { %552 = vmatprep.subr.bf16.mxu1 %v725_v1 }
  0x54   :  { %548 = vmatpush3.bf16.msra.mxu0 %v547_v9  ;;  %p673_p8 = pnand %p672_p7, %p666_p4 }
  0x56   :  { %554 = vmatpush3.bf16.msra.mxu1 %v553_v30 }
  0x57   :  { %523 = vmatmul.mubr.msk.f32.vlgmr.msra.gmra.mrb[0].mxu0 %vm184_vm2, %v101_v10  ;;  %555 = vmatprep.subr.bf16.mxu1 %v725_v1 }
 0x12a   :  { %v254_v12 = vpop.f32.mrb[0].mxu0 }
 0x12b   :  { %v558_v13 = vadd.f32 %v487_v11, %v254_v12  ;;  %v524_v14 = vpop.f32.mrb[1].mxu0 }
 0x12d   :  { %573 = vtanh.f32 %v558_v13 }
 0x137   :  { %v574_v15 = vpop.eup %573 }
 0x138   :  { %267 = vrot.lane.b32.xlu0 %v574_v15, %s726_s4  ;;  %v259_v17 = vmul.f32 0.5, %v574_v15 }
 0x13a   :  { %v260_v18 = vadd.f32 0.5, %v259_v17 }
 0x13c   :  { %262 = vrot.lane.b32.xlu0 %v102_v16, %s727_s21 }
 0x1aa   :  { %v268_v19 = vpop.permute.xlu0 %267 }
 0x1ab   :  { %v270_v20 = vmul.f32 %v268_v19, %v260_v18 }
 0x1ad   :  { %272 = vrot.lane.b32.xlu1 %v270_v20, %s727_s21 }
 0x1ae   :  { %v263_v21 = vpop.permute.xlu0 %262 }
 0x1af   :  { %v265_v22 = vmul.f32 %v263_v21, %v260_v18 }
 0x21f   :  { %v273_v23 = vpop.permute.xlu1 %272 }
 0x220   :  { %v275_v24 = vadd.f32 %v273_v23, %v265_v22 }
 0x222   :  { %575 = vtanh.f32 %v275_v24 }
 0x22c   :  { %v576_v31 = vpop.eup %575 }
 0x22d   :  { %278 = vrot.lane.b32.xlu1 %v576_v31, %s726_s4 }
 0x231   :  { %448 = vrot.lane.b32.xlu1 %v275_v24, %s728_s13 }
 0x29f   :  { %v279_v32 = vpop.permute.xlu1 %278 }
 0x2a0   :  { %v281_v33 = vmul.f32 %v279_v32, %v260_v18 }
 0x2a2   :  { %289 = vrot.lane.b32.xlu0 %v281_v33, %s727_s21 }
 0x2a3   :  { %v449_v34 = vpop.permute.xlu1 %448 }
 0x2a4   :  { %451 = vst.msk [vmem:[#allocation11] sm:$0xff] %vm184_vm2, %v449_v34 }
 0x314   :  { %v290_v35 = vpop.permute.xlu0 %289 }
 0x315   :  { %446 = vst.msk [vmem:[#allocation10] sm:$0xff] %vm184_vm2, %v290_v35  ;;  %534 = vmatmul.mubr.msk.f32.vlgmr.msra.gmra.mrb[0].mxu1 %vm184_vm2, %v290_v35 }
 0x316   :  { %540 = vmatprep.mubr.msk.f32.mxu1 %vm724_vm0, %v723_v0  ;;  %557 = vmatpush3.bf16.msra.mxu1 %v556_v38 }
 0x3e8   :  { %v359_v40 = vpop.f32.mrb[0].mxu1 }
 0x3e9   :  { %v360_v41 = vadd.f32 %v490_v39, %v359_v40  ;;  %v535_v42 = vpop.f32.mrb[1].mxu1 }
 0x3eb   :  { %v363_v43 = vmax.f32 %v360_v41, 0.0 }
 0x3ed   :  { %541 = vmatmul.mubr.msk.f32.vlgmr.msra.gmra.mrb[2].mxu1 %vm370_vm3, %v363_v43 }
 0x3ee   :  { %676 = shalt.err (!%p673_p8)
}
 0x3ef   :  { %s677_s0 = scalar_lea.hbm %s934_s11, 128 }
 0x3f0   :  { %p678_p9 = scmp.ne.s32.totalorder %s934_s11, %s677_s0  ;;  %p681_p10 = scmp.lt.u32.totalorder %s677_s0, %s934_s11 }
 0x3f2   :  { %p683_p11 = pnand %p681_p10, %p678_p9 }
 0x3f4   :  { %686 = shalt.err (!%p683_p11)
}
 0x3f5   :  { %463 = dma.vmem_to_hbm [thread:$0]  %s461_s16, 128, %s934_s11, [#allocation4]  }
 0x3f6   :  { %s687_s23 = scalar_lea.vmem %s471_s18, 128  ;;  %p692_p13 = scmp.lt.s32.totalorder %s471_s18, %s471_s18 }
 0x3f7   :  { %p688_p12 = scmp.ne.s32.totalorder %s471_s18, %s687_s23  ;;  %p693_p0 = scmp.lt.s32.totalorder %s687_s23, %s687_s23 }
 0x3f9   :  { %p694_p1 = por %p693_p0, %p692_p13 }
 0x3fb   :  { %p695_p2 = pnand %p694_p1, %p688_p12 }
 0x3fd   :  { %698 = shalt.err (!%p695_p2)
}
 0x3fe   :  { %s699_s1 = scalar_lea.hbm %s935_s12, 128 }
 0x3ff   :  { %p700_p3 = scmp.ne.s32.totalorder %s935_s12, %s699_s1  ;;  %p703_p4 = scmp.lt.u32.totalorder %s699_s1, %s935_s12 }
 0x401   :  { %p705_p5 = pnand %p703_p4, %p700_p3 }
 0x403   :  { %708 = shalt.err (!%p705_p5)
}
 0x404   :  { %473 = dma.vmem_to_hbm [thread:$0]  %s471_s18, 128, %s935_s12, [#allocation12]   ;;  %v492_v44 = vld [vmem:[#allocation8] ss:$0 sm:$0xff] }
 0x4c0   :  { %v440_v45 = vpop.f32.mrb[2].mxu1 }
 0x4c1   :  { %v441_v46 = vadd.f32 %v492_v44, %v440_v45  ;;  %v542_v47 = vpop.f32.mrb[3].mxu1 }
 0x4c3   :  { %444 = vst [vmem:[%s933_s10] sm:$0xff] %v441_v46 }
 0x4c4   :  { %715 = dma.done.wait [#allocation4], 128  }
 0x4c5   :  { %716 = vsyncadd [#allocation4], 4294967168 }
 0x4c6   :  { %717 = dma.done.wait [#allocation12], 128  }
 0x4c7   :  { %718 = vsyncadd [#allocation12], 4294967168 }
 0x4c8   :  { %482 = vsyncpa [#allocation3], 1 }
 0x4c9   :  { %483 = vsyncpa [#allocation6], 1 }
 0x4ca   :  { %484 = vsyncpa [#allocation9], 1 }
 0x4cb   :  { %485 = vsyncpa [#allocation4], 1 }
 0x4cc   :  { %486 = vsyncpa [#allocation12], 1 }

</bundles_post_ra>
